<compile_context>
chip_gen: v7x
topology: tpu7x:2x2x1
jax: 0.10.0
libtpu: 0.0.40
codegen_flags: <defaults>
</compile_context>

<pallas_src>
import jax
import jax.numpy as jnp
from jax.experimental import pallas as pl
from jax.experimental.pallas import tpu as pltpu


# ----------------------------------------------------------------------------
# Context validation (same checks as TDNN.check_valid_context)
# ----------------------------------------------------------------------------
def check_valid_context(context, full_context):
    context = sorted(context)
    if full_context:
        assert len(context) <= 2, (
            "If the full context is given one must only define the smallest and largest")
        if len(context) == 2:
            assert context[0] + context[-1] == 0, "The context must be symmetric"
    else:
        assert len(context) % 2 != 0, "The context size must be odd"
        assert context[len(context) // 2] == 0, "The context contain 0 in the center"
        if len(context) > 1:
            delta = [context[i] - context[i - 1] for i in range(1, len(context))]
            assert all(delta[0] == delta[i] for i in range(1, len(delta))), (
                "Intra context spacing must be equal!")
    return context


def conv_params_from_context(context, full_context):
    context = check_valid_context(list(context), full_context)
    if full_context:
        kernel_size = context[-1] - context[0] + 1 if len(context) > 1 else 1
        dilation = 1
    else:
        kernel_size = len(context)
        dilation = context[1] - context[0]
    return kernel_size, dilation


def _round_up(n, m):
    return (n + m - 1) // m * m


# ----------------------------------------------------------------------------
# Pallas kernel: one fused im2col matmul tile + bias + ReLU
# ----------------------------------------------------------------------------
def _tdnn_kernel(x_ref, w_ref, b_ref, o_ref):
    # x_ref: (1, t_tile, kc_pad)   w_ref: (kc_pad, co_tile)
    # b_ref: (1, co_tile)          o_ref: (1, t_tile, co_tile)
    acc = jnp.dot(x_ref[0], w_ref[...], preferred_element_type=jnp.float32)
    acc = acc + b_ref[...].astype(jnp.float32)           # f32 epilogue (v5e-safe)
    o_ref[0] = jnp.maximum(acc, 0.0).astype(o_ref.dtype)


def tdnn_forward(x, weight, bias, *, dilation, trim_output=True):
    """x: [B, T, C_in]; weight: [C_out, C_in, K] (PyTorch Conv1d layout); bias: [C_out]."""
    B, T, C_in = x.shape
    C_out, _, K = weight.shape
    T_out = T - dilation * (K - 1)
    assert T_out > 0

    itemsize = jnp.dtype(x.dtype).itemsize
    sub = {4: 8, 2: 16, 1: 32}.get(itemsize, 8)           # sublane multiple per dtype

    KC = K * C_in
    kc_pad = _round_up(KC, 128)                           # contraction, lane-aligned
    c_out_pad = _round_up(C_out, 128)

    # ---- VMEM budget from the actual chip (v5e/v6e: 128 MiB, v7x: 64 MiB) ----
    try:
        vmem_cap = int(pltpu.get_tpu_info().vmem_capacity_bytes)
    except Exception:
        vmem_cap = 64 << 20                               # conservative fallback
    budget = max(24 << 20, int(0.70 * vmem_cap))
    vmem_limit = max(32 << 20, int(0.80 * vmem_cap))

    # ---- tile sizing ---------------------------------------------------------
    t_tile = min(_round_up(T_out, sub), 512)
    co_tile = c_out_pad                                   # full weight resident if it fits

    def _footprint(tt, ct):
        # double-buffered x / weight / out tiles + bias (sublane-padded) + slack
        return (2 * (tt * kc_pad + kc_pad * ct + tt * ct) * itemsize
                + 2 * 8 * ct * 4 + (1 << 20))

    # prefer shrinking co_tile (keeps MXU M tall), then t_tile down to 128
    while _footprint(t_tile, co_tile) > budget and co_tile > 128:
        co_tile = _round_up(co_tile // 2, 128)
    while _footprint(t_tile, co_tile) > budget and t_tile > 128:
        t_tile = _round_up(t_tile // 2, sub)
    # TODO(synk): for very large K*C_in add a KC grid axis ("arbitrary") with an
    # f32 accumulator scratch instead of shrinking t_tile below 128.
    while _footprint(t_tile, co_tile) > budget and t_tile > sub:
        t_tile = max(sub, _round_up(t_tile // 2, sub))

    t_out_pad = _round_up(T_out, t_tile)
    n_t = t_out_pad // t_tile
    n_co = c_out_pad // co_tile

    # v7x megacore: keep at least one parallel axis with extent >= 2 if possible.
    if B * n_t * n_co < 2 and T_out > sub:
        t_tile = _round_up((T_out + 1) // 2, sub)
        t_out_pad = _round_up(T_out, t_tile)
        n_t = t_out_pad // t_tile

    # ---- im2col with padding fused into the tap concatenation ---------------
    cols = [jax.lax.slice_in_dim(x, k * dilation, k * dilation + T_out, axis=1)
            for k in range(K)]
    if kc_pad > KC:
        cols.append(jnp.zeros((B, T_out, kc_pad - KC), x.dtype))
    x_col = jnp.concatenate(cols, axis=-1)                # (B, T_out, kc_pad), one pass
    if t_out_pad > T_out:
        x_col = jnp.concatenate(
            [x_col, jnp.zeros((B, t_out_pad - T_out, kc_pad), x.dtype)], axis=1)

    # weight [C_out, C_in, K] -> [K*C_in, C_out] matching the im2col tap layout
    w_mat = jnp.transpose(weight, (2, 1, 0)).reshape(KC, C_out).astype(x.dtype)
    w_mat = jnp.pad(w_mat, ((0, kc_pad - KC), (0, c_out_pad - C_out)))
    b_vec = jnp.pad(bias.reshape(1, C_out).astype(jnp.float32),
                    ((0, 0), (0, c_out_pad - C_out)))

    # ---- grid: co OUTERMOST so the weight/bias block index is constant across
    # all inner (B, t) steps -> weight DMA'd from HBM exactly once. -------------
    grid = (n_co, B, n_t)

    cost = pl.CostEstimate(
        flops=2 * B * t_out_pad * kc_pad * c_out_pad,
        transcendentals=0,
        bytes_accessed=int(B * t_out_pad * kc_pad * itemsize        # x read once
                           + kc_pad * c_out_pad * itemsize          # weight read once
                           + c_out_pad * 4                          # bias
                           + B * t_out_pad * c_out_pad * itemsize)) # output written once

    out = pl.pallas_call(
        _tdnn_kernel,
        out_shape=jax.ShapeDtypeStruct((B, t_out_pad, c_out_pad), x.dtype),
        grid_spec=pltpu.PrefetchScalarGridSpec(
            num_scalar_prefetch=0,
            grid=grid,
            in_specs=[
                pl.BlockSpec((1, t_tile, kc_pad), lambda co, b, ti: (b, ti, 0)),
                pl.BlockSpec((kc_pad, co_tile), lambda co, b, ti: (0, co)),
                pl.BlockSpec((1, co_tile), lambda co, b, ti: (0, co)),
            ],
            out_specs=pl.BlockSpec((1, t_tile, co_tile),
                                   lambda co, b, ti: (b, ti, co)),
        ),
        compiler_params=pltpu.CompilerParams(
            dimension_semantics=("parallel", "parallel", "parallel"),
            vmem_limit_bytes=vmem_limit),
        cost_estimate=cost,
    )(x_col, w_mat, b_vec)

    if trim_output:
        # No-op when T_out / C_out are already tile multiples; for a full model,
        # keep the padded activation flowing and slice only at the boundary.
        out = out[:, :T_out, :C_out]
    return out


# ----------------------------------------------------------------------------
# Module wrapper: weight_norm parameterization done in plain JAX (glue)
# ----------------------------------------------------------------------------
class TDNNPallas:
    def __init__(self, context, input_channels, output_channels,
                 full_context=True, *, key):
        self.input_dim = input_channels
        self.output_dim = output_channels
        self.kernel_size, self.dilation = conv_params_from_context(
            context, full_context)

        kv, kg, kb = jax.random.split(key, 3)
        # weight_norm(Conv1d): weight = g * v / ||v||_(dims 1,2), per out channel
        self.v = jax.random.normal(
            kv, (output_channels, input_channels, self.kernel_size),
            dtype=jnp.float32) * 0.1
        self.g = 1.0 + 0.01 * jax.random.normal(
            kg, (output_channels, 1, 1), dtype=jnp.float32)
        self.bias = 0.1 * jax.random.normal(
            kb, (output_channels,), dtype=jnp.float32)

    def weight(self):
        norm = jnp.sqrt(jnp.sum(self.v ** 2, axis=(1, 2), keepdims=True))
        return self.g * self.v / norm

    def __call__(self, x):
        return tdnn_forward(x, self.weight(), self.bias, dilation=self.dilation)


# ----------------------------------------------------------------------------
# Pure-JAX reference (for correctness sanity check)
# ----------------------------------------------------------------------------
def tdnn_reference(x, weight, bias, dilation):
    x_ncw = jnp.transpose(x, (0, 2, 1))
    y = jax.lax.conv_general_dilated(
        x_ncw, weight, window_strides=(1,), padding="VALID",
        rhs_dilation=(dilation,),
        dimension_numbers=("NCH", "OIH", "NCH"))
    y = y + bias[None, :, None]
    y = jnp.maximum(y, 0.0)
    return jnp.transpose(y, (0, 2, 1))


if __name__ == "__main__":
    key = jax.random.PRNGKey(0)
    k1, k2, k_x = jax.random.split(key, 3)

    B, T, C_in, C_out = 2, 16, 4, 8
    x = jax.random.normal(k_x, (B, T, C_in), dtype=jnp.float32)

    # Case 1: full context [-2, 2] -> kernel_size 5, dilation 1
    layer1 = TDNNPallas([-2, 2], C_in, C_out, True, key=k1)
    out1 = jax.block_until_ready(layer1(x))
    ref1 = tdnn_reference(x, layer1.weight(), layer1.bias, layer1.dilation)
    assert out1.shape == (B, T - layer1.dilation * (layer1.kernel_size - 1), C_out)
    assert jnp.allclose(out1, ref1, atol=1e-5, rtol=1e-5)

    # Case 2: non-full context [-2, 0, 2] -> kernel_size 3, dilation 2
    layer2 = TDNNPallas([-2, 0, 2], C_in, C_out, False, key=k2)
    out2 = jax.block_until_ready(layer2(x))
    ref2 = tdnn_reference(x, layer2.weight(), layer2.bias, layer2.dilation)
    assert out2.shape == (B, T - layer2.dilation * (layer2.kernel_size - 1), C_out)
    assert jnp.allclose(out2, ref2, atol=1e-5, rtol=1e-5)

    print("KERNEL_OK")
</pallas_src>

<mosaic_0001>
module attributes {stable_mosaic.version = 11 : i64} {
  func.func @_tdnn_kernel(%arg0: i32, %arg1: i32, %arg2: i32, %arg3: memref<1x16x128xf32, #tpu.memory_space<vmem>>, %arg4: memref<128x128xf32, #tpu.memory_space<vmem>>, %arg5: memref<1x128xf32, #tpu.memory_space<vmem>>, %arg6: memref<1x16x128xf32, #tpu.memory_space<vmem>>) attributes {dimension_semantics = [#tpu.dimension_semantics<parallel>, #tpu.dimension_semantics<parallel>, #tpu.dimension_semantics<parallel>], iteration_bounds = array<i64: 1, 2, 1>, scalar_prefetch = 0 : i64, scratch_operands = 0 : i64, tpu.core_type = #tpu.core_type<tc>, window_params = [{transform_indices = @transform_0, window_bounds = array<i64: 1, 16, 128>}, {transform_indices = @transform_1, window_bounds = array<i64: 128, 128>}, {transform_indices = @transform_2, window_bounds = array<i64: 1, 128>}, {transform_indices = @transform_3, window_bounds = array<i64: 1, 16, 128>}]} {
    %c0 = arith.constant 0 : index
    %c0_0 = arith.constant 0 : index
    %c0_1 = arith.constant 0 : index
    %0 = vector.load %arg3[%c0, %c0_0, %c0_1] : memref<1x16x128xf32, #tpu.memory_space<vmem>>, vector<1x16x128xf32>
    %1 = vector.shape_cast %0 : vector<1x16x128xf32> to vector<16x128xf32>
    %c0_2 = arith.constant 0 : index
    %c0_3 = arith.constant 0 : index
    %2 = vector.load %arg4[%c0_2, %c0_3] : memref<128x128xf32, #tpu.memory_space<vmem>>, vector<128x128xf32>
    %cst = arith.constant dense<0.000000e+00> : vector<16x128xf32>
    %3 = tpu.matmul %1, %2, %cst {dimension_numbers = #tpu.dot_dimension_numbers<[1], [0], [0], [1], [0, 0, 1, 1], [], []>} : vector<16x128xf32>, vector<128x128xf32>, vector<16x128xf32> -> vector<16x128xf32>
    %c0_4 = arith.constant 0 : index
    %c0_5 = arith.constant 0 : index
    %4 = vector.load %arg5[%c0_4, %c0_5] : memref<1x128xf32, #tpu.memory_space<vmem>>, vector<1x128xf32>
    %5 = vector.broadcast %4 : vector<1x128xf32> to vector<16x128xf32>
    %6 = arith.addf %3, %5 : vector<16x128xf32>
    %cst_6 = arith.constant 0.000000e+00 : f32
    %7 = vector.broadcast %cst_6 : f32 to vector<16x128xf32>
    %8 = arith.maximumf %6, %7 : vector<16x128xf32>
    %c0_7 = arith.constant 0 : index
    %c0_8 = arith.constant 0 : index
    %c0_9 = arith.constant 0 : index
    %9 = vector.load %arg6[%c0_7, %c0_8, %c0_9] : memref<1x16x128xf32, #tpu.memory_space<vmem>>, vector<1x16x128xf32>
    %10 = vector.shape_cast %9 : vector<1x16x128xf32> to vector<16x128xf32>
    %11 = vector.shape_cast %8 : vector<16x128xf32> to vector<1x16x128xf32>
    tpu.vector_store %arg6[%c0_7, %c0_8, %c0_9], %11 {strides = array<i32>} : memref<1x16x128xf32, #tpu.memory_space<vmem>>, vector<1x16x128xf32>,
    return
  }
  func.func @transform_0(%arg0: i32, %arg1: i32, %arg2: i32) -> (i32, i32, i32) {
    %c0_i32 = arith.constant 0 : i32
    %c0_i32_0 = arith.constant 0 : i32
    return %arg1, %arg2, %c0_i32 : i32, i32, i32
  }
  func.func @transform_1(%arg0: i32, %arg1: i32, %arg2: i32) -> (i32, i32) {
    %c0_i32 = arith.constant 0 : i32
    %c0_i32_0 = arith.constant 0 : i32
    return %c0_i32, %arg0 : i32, i32
  }
  func.func @transform_2(%arg0: i32, %arg1: i32, %arg2: i32) -> (i32, i32) {
    %c0_i32 = arith.constant 0 : i32
    %c0_i32_0 = arith.constant 0 : i32
    return %c0_i32, %arg0 : i32, i32
  }
  func.func @transform_3(%arg0: i32, %arg1: i32, %arg2: i32) -> (i32, i32, i32) {
    %c0_i32 = arith.constant 0 : i32
    return %arg1, %arg2, %arg0 : i32, i32, i32
  }
}

</mosaic_0001>

<bundles_post_ra>
// kernel: tpu_custom_call.1
= control target key start
LH: loop header
LB: loop body
LE: loop exit
PB: predicated region body
PF: predicated region fallthrough
CT: control target
= control target key end

     0   :  { %8 = vsyncpa [#allocation3], 0  ;;  %s1082_s0 = inlined_call_operand.hbm [shape: f32[2,16,128], index: 0, kind: input, shape index: {}]   ;;  %s1083_s1 = inlined_call_operand.hbm [shape: f32[128,128], index: 1, kind: input, shape index: {}]   ;;  %s1084_s2 = inlined_call_operand.vmem [shape: f32[1,128], index: 2, kind: input, shape index: {}]   ;;  %s1085_s3 = inlined_call_operand.hbm [shape: f32[2,16,128], index: 3, kind: output, shape index: {}]  }
   0x1   :  { %10 = vsyncpa [#allocation3 + $0x1], 0 }
   0x2   :  { %11 = vsyncpa [#allocation6], 0 }
   0x3   :  { %12 = vsyncpa [#allocation4], 0 }
   0x4   :  { %14 = vsyncpa [#allocation4 + $0x1], 0  ;;  %s846_s12 = smov 0   ;;  %s848_s13 = smov 0  }
   0x5   :  { %s850_s14 = smov 0   ;;  %s852_s15 = smov 0  }
   0x6   :  { %s854_s16 = smov 0   ;;  %s856_s17 = smov 0  }
   0x7 LB: > { %s490_s18 = sadd.s32 4294967295, %s817_s17   ;;  %s491_s19 = sadd.s32 4294967294, %s817_s17   ;;  %s817_s17 = sphi %s856_s17, %s20_s17   ;;  %s813_s16 = sphi %s854_s16, %s1109_s16   ;;  %s809_s15 = sphi %s852_s15, %s1108_s15   ;;  %s805_s14 = sphi %s850_s14, %s1107_s14   ;;  %s801_s13 = sphi %s848_s13, %s1106_s13   ;;  %s797_s12 = sphi %s846_s12, %s1105_s12  }
   0x8   : > { %p61_p0 = scmp.ne.s32.totalorder %s801_s13, %s797_s12  ;;  %p880_p1 = scmp.eq.s32.totalorder %s490_s18, 0 }
   0x9   : > { %p884_p2 = scmp.eq.s32.totalorder %s490_s18, 1  ;;  %p147_p3 = scmp.eq.s32.totalorder %s491_s19, 1 }
   0xa   : > { %s1090_s20 = scalar_select %p880_p1, 1, 0 }
   0xb   : > { %s1091_s21 = scalar_select %p884_p2, 1, 0 }
   0xc   : > { %p890_p4 = por %p880_p1, %p61_p0  ;;  %p492_p5 = scmp.ge.s32.totalorder %s817_s17, 1 }
   0xd   : > { %p895_p6 = por %p147_p3, %p61_p0  ;;  %p154_p7 = scmp.lt.s32.totalorder %s817_s17, 3 }
   0xe   : > { %s1092_s22 = scalar_select %p890_p4, 1, 0 }
   0xf   : > { %s1093_s23 = scalar_select %p895_p6, 1, 0 }
  0x10   : > { %p900_p8 = pnand %p492_p5, %p154_p7  ;;  %s819_s25 = smov [#allocation5]  }
  0x11   : > { %s168_s26 = sshll.u32 %s819_s25, 4  ;;  %s35_s28 = sadd.s32 1, %s813_s16  ;;  %s169_s26 = int_to_ptr.vmem [resolvable:$true] %s168_s26 }
  0x12   : > { %s1094_s24 = scalar_select %p900_p8, 1, 0 }
  0x13   : > { %p604_p9 = pneg %p900_p8  ;;  %s673_s4 = scalar_lea.hbm %s1083_s1, 2048 }
  0x14   : > { %p674_p12 = scmp.ne.s32.totalorder %s1083_s1, %s673_s4  ;;  %p680_p5 = scmp.lt.u32.totalorder %s673_s4, %s1083_s1 }
  0x15   : > { %p909_p11 = pnand %p604_p9, %p880_p1 }
  0x17   : > { %p675_p13 = pneg %p909_p11 }
  0x19   : > { %p676_p0 = pnand %p675_p13, %p674_p12 }
  0x1b   : > { %p677_p3 = pneg %p676_p0 }
  0x1d   : > { %p682_p7 = pnand %p680_p5, %p677_p3 }
  0x1f   : > { %685 = shalt.err (!%p682_p7)
}
  0x20   : > { %s686_s9 = scalar_lea.vmem %s169_s26, 2048  ;;  %p694_p1 = scmp.lt.s32.totalorder %s169_s26, %s169_s26 }
  0x21   : > { %p687_p9 = scmp.ne.s32.totalorder %s169_s26, %s686_s9  ;;  %p695_p4 = scmp.lt.s32.totalorder %s686_s9, %s686_s9 }
  0x23   : > { %p689_p10 = pnand %p687_p9, %p675_p13  ;;  %p696_p8 = por %p695_p4, %p694_p1 }
  0x25   : > { %p690_p6 = pneg %p689_p10 }
  0x27   : > { %p697_p2 = pnand %p696_p8, %p690_p6 }
  0x29   : > { %700 = shalt.err (!%p697_p2)
}
  0x2a   : > { %s820_s10 = smov 128   ;;  %s821_s11 = smov 8  }
  0x2b   : > { %607 = dma.hbm_to_vmem [thread:$0]  (!%p909_p11), %s1083_s1, 2048, %s169_s26, [#allocation6], %s820_s10, %s820_s10, %s821_s11  }
  0x2c   : > { %p37_p1 = scmp.ge.s32.totalorder %s35_s28, 2  ;;  %s48_s25 = sadd.s32 1, %s805_s14 }
  0x2d   : > { %p55_p2 = scmp.ne.s32.totalorder %s805_s14, %s801_s13  ;;  %p56_p4 = scmp.eq.s32.totalorder %s817_s17, 0 }
  0x2e   : > { %s1111_s28 = smov (%p37_p1, %s35_s28), 0  ;;  %p1097_p8 = scmp.ne.s32.totalorder %s1091_s21, 0 }
  0x2f   : > { %p939_p6 = por %p56_p4, %p55_p2  ;;  %s43_s30 = ssub.s32 %s813_s16, %s1111_s28 }
  0x30   : > { %p945_p10 = por %p1097_p8, %p55_p2  ;;  %p617_p12 = scmp.lt.s32.totalorder %s817_s17, 2 }
  0x31   : > { %p46_p11 = scmp.eq.s32.totalorder %s43_s30, 0  ;;  %s188_s26 = sand.u32 1, %s805_s14  }
  0x32   : > { %s496_s4 = sshll.u32 %s188_s26, 4  ;;  %s509_s6 = sshll.u32 %s813_s16, 8 }
  0x33   : > { %s954_s5 = scalar_select %p46_p11, %s805_s14, %s48_s25  }
  0x34   : > { %s960_s9 = scalar_lea.hbm %s1082_s0, %s509_s6  ;;  %s192_s21 = scalar_lea.vmem [#allocation2], %s496_s4 }
  0x35   : > { %s201_s18 = sshll.u32 %s192_s21, 4  ;;  %p966_p13 = pnand %p617_p12, %p939_p6  ;;  %s962_s18 = int_to_ptr.vmem [resolvable:$true] %s201_s18 }
  0x36   : > { %s970_s25 = scalar_lea.sflag [#allocation3], %s188_s26  ;;  %s701_s30 = scalar_lea.hbm %s960_s9, 256 }
  0x37   : > { %p702_p0 = scmp.ne.s32.totalorder %s960_s9, %s701_s30  ;;  %p703_p3 = pneg %p966_p13 }
  0x38   : > { %s706_s29 = scalar_lea.hbm %s1082_s0, 512  ;;  %p707_p9 = scmp.lt.u32.totalorder %s960_s9, %s1082_s0 }
  0x39   : > { %p704_p5 = pnand %p703_p3, %p702_p0  ;;  %p708_p1 = scmp.lt.u32.totalorder %s706_s29, %s701_s30 }
  0x3a   : > { %p710_p4 = scmp.lt.u32.totalorder %s701_s30, %s960_s9 }
  0x3b   : > { %p705_p7 = pneg %p704_p5  ;;  %p709_p2 = por %p708_p1, %p707_p9 }
  0x3d   : > { %p711_p6 = por %p710_p4, %p709_p2 }
  0x3f   : > { %p712_p8 = pnand %p711_p6, %p705_p7 }
  0x41   : > { %715 = shalt.err (!%p712_p8)
}
  0x42   : > { %s716_s26 = scalar_lea.vmem %s962_s18, 256  ;;  %s822_s21 = smov [#allocation2]  }
  0x43   : > { %p717_p12 = scmp.ne.s32.totalorder %s962_s18, %s716_s26  ;;  %s721_s4 = sshll.u32 %s822_s21, 4  ;;  %s722_s4 = int_to_ptr.vmem [resolvable:$false] %s721_s4 }
  0x44   : > { %s723_s6 = scalar_lea.vmem %s722_s4, 512  ;;  %p724_p5 = scmp.lt.s32.totalorder %s962_s18, %s722_s4 }
  0x45   : > { %p719_p11 = pnand %p717_p12, %p703_p3  ;;  %p725_p9 = scmp.lt.s32.totalorder %s723_s6, %s716_s26 }
  0x47   : > { %p720_p0 = pneg %p719_p11  ;;  %p726_p1 = por %p725_p9, %p724_p5 }
  0x49   : > { %p727_p2 = pnand %p726_p1, %p720_p0 }
  0x4b   : > { %730 = shalt.err (!%p727_p2)
}
  0x4c   : > { %611 = dma.hbm_to_vmem [thread:$0]  (!%p966_p13), %s960_s9, 256, %s962_s18, %s970_s25, %s820_s10, %s820_s10, %s821_s11  }
  0x4d   : > { %p1100_p3 = scmp.ne.s32.totalorder %s1094_s24, 0 }
  0x4e   : > { %s1004_s30 = sand.u32 (!%p1100_p3), 1, %s801_s13   ;;  %p1101_p7 = scmp.ne.s32.totalorder (!%p1100_p3), %s1092_s22, 0 }
  0x4f   : > { %213 = sbr.rel (%p1100_p3) target bundleno = 357 (0x165), region = 32  ;;  %s500_s29 = sshll.u32 (!%p1100_p3), %s1004_s30, 4 }
  0x50   : > { %s216_s7 = scalar_lea.sflag (!%p1100_p3), [#allocation3], %s1004_s30  ;;  %s1010_s19 = scalar_lea.vmem (!%p1100_p3), [#allocation2], %s500_s29 }
  0x56   : > { %784 = dma.done.wait (%p1101_p7), %s216_s7, 256  }
  0x57   : > { %786 = vsyncadd (%p1101_p7), %s216_s7, 4294967040  ;;  %p1102_p13 = scmp.ne.s32.totalorder %s1090_s20, 0 }
  0x59   : > { %788 = dma.done.wait (%p1102_p13), [#allocation6], 2048  }
  0x5a   : > { %790 = vsyncadd (%p1102_p13), [#allocation6], 4294965248  ;;  %v256_v0 = vld [vmem:[#allocation5] sm:$0xff]  ;;  %v257_v1 = vld [vmem:[#allocation5 + $0x8] sm:$0xff]  ;;  %s248_s24 = scalar_lea.vmem [#allocation7], %s500_s29  ;;  %s510_s11 = sshll.u32 %s809_s15, 8 }
  0x5b   : > { %v258_v2 = vld [vmem:[#allocation5 + $0x10] sm:$0xff]  ;;  %v564_v3 = vpack.c.bf16 %v257_v1, %v256_v0  ;;  %v259_v4 = vld [vmem:[#allocation5 + $0x18] sm:$0xff]  ;;  %v260_v6 = vld [vmem:[#allocation5 + $0x20] sm:$0xff]  ;;  %s375_s10 = sshll.u32 %s248_s24, 4  ;;  %s1033_s25 = scalar_lea.hbm %s1085_s3, %s510_s11  ;;  %s1028_s10 = int_to_ptr.vmem [resolvable:$true] %s375_s10 }
  0x5c   : > { %v568_v5 = vpack.c.bf16 %v259_v4, %v258_v2  ;;  %v261_v7 = vld [vmem:[#allocation5 + $0x28] sm:$0xff]  ;;  %v254_v9 = vld [vmem:[%s1010_s19] sm:$0xff]  ;;  %v263_v11 = vld [vmem:[#allocation5 + $0x38] sm:$0xff]  ;;  %s359_s8 = scalar_lea.sflag [#allocation4], %s1004_s30  ;;  %s731_s26 = scalar_lea.vmem %s1028_s10, 256 }
  0x5d   : > { %565 = vmatprep.subr.bf16.mxu0 %v564_v3  ;;  %v572_v8 = vpack.c.bf16 %v261_v7, %v260_v6  ;;  %v262_v10 = vld [vmem:[#allocation5 + $0x30] sm:$0xff]  ;;  %561 = vmatprep.mubr.f32.mxu0 %v254_v9  ;;  %v264_v13 = vld [vmem:[#allocation5 + $0x40] sm:$0xff]  ;;  %v265_v14 = vld [vmem:[#allocation5 + $0x48] sm:$0xff]  ;;  %p732_p4 = scmp.ne.s32.totalorder %s1028_s10, %s731_s26  ;;  %s823_s15 = smov [#allocation7]  }
  0x5e   : > { %567 = vmatpush3.bf16.msra.mxu0 %v564_v3  ;;  %v576_v12 = vpack.c.bf16 %v263_v11, %v262_v10  ;;  %v580_v15 = vpack.c.bf16 %v265_v14, %v264_v13  ;;  %v266_v16 = vld [vmem:[#allocation5 + $0x50] sm:$0xff]  ;;  %v267_v17 = vld [vmem:[#allocation5 + $0x58] sm:$0xff]  ;;  %v268_v19 = vld [vmem:[#allocation5 + $0x60] sm:$0xff]  ;;  %s735_s21 = sshll.u32 %s823_s15, 4  ;;  %s736_s21 = int_to_ptr.vmem [resolvable:$false] %s735_s21 }
  0x5f   : > { %569 = vmatprep.subr.bf16.mxu0 %v568_v5  ;;  %v584_v18 = vpack.c.bf16 %v267_v17, %v266_v16  ;;  %v269_v20 = vld [vmem:[#allocation5 + $0x68] sm:$0xff]  ;;  %v270_v22 = vld [vmem:[#allocation5 + $0x70] sm:$0xff]  ;;  %v271_v23 = vld [vmem:[#allocation5 + $0x78] sm:$0xff]  ;;  %p733_p6 = pnand %p732_p4, %p945_p10  ;;  %s737_s4 = scalar_lea.vmem %s736_s21, 512 }
  0x60   : > { %v588_v21 = vpack.c.bf16 %v269_v20, %v268_v19  ;;  %v592_v24 = vpack.c.bf16 %v271_v23, %v270_v22  ;;  %v255_v25 = vld [vmem:[%s1010_s19 + $0x8] sm:$0xff]  ;;  %v503_v26 = vld [vmem:[%s1084_s2] ss:$0 sm:$0xff]  ;;  %p738_p12 = scmp.lt.s32.totalorder %s1028_s10, %s736_s21  ;;  %p739_p11 = scmp.lt.s32.totalorder %s737_s4, %s731_s26 }
  0x61   : > { %p734_p8 = pneg %p733_p6 }
  0x62   : > { %571 = vmatpush3.bf16.msra.mxu0 %v568_v5  ;;  %p740_p0 = por %p739_p11, %p738_p12 }
  0x63   : > { %573 = vmatprep.subr.bf16.mxu0 %v572_v8 }
  0x64   : > { %p741_p5 = pnand %p740_p0, %p734_p8 }
  0x66   : > { %575 = vmatpush3.bf16.msra.mxu0 %v572_v8 }
  0x67   : > { %577 = vmatprep.subr.bf16.mxu0 %v576_v12 }
  0x6a   : > { %579 = vmatpush3.bf16.msra.mxu0 %v576_v12 }
  0x6b   : > { %581 = vmatprep.subr.bf16.mxu0 %v580_v15 }
  0x6e   : > { %583 = vmatpush3.bf16.msra.mxu0 %v580_v15 }
  0x6f   : > { %585 = vmatprep.subr.bf16.mxu0 %v584_v18 }
  0x72   : > { %587 = vmatpush3.bf16.msra.mxu0 %v584_v18 }
  0x73   : > { %589 = vmatprep.subr.bf16.mxu0 %v588_v21 }
  0x76   : > { %591 = vmatpush3.bf16.msra.mxu0 %v588_v21 }
  0x77   : > { %593 = vmatprep.subr.bf16.mxu0 %v592_v24 }
  0x7a   : > { %595 = vmatpush3.bf16.msra.mxu0 %v592_v24 }
  0x7d   : > { %562 = vmatmul.mubr.f32.vlgmr.msra.gmra.mrb[0].mxu0 %v255_v25 }
 0x150   : > { %v563_v27 = vpop.f32.mrb[0].mxu0 }
 0x151   : > { %v351_v28 = vadd.f32 %v563_v27, %v503_v26  ;;  %v345_v29 = vpop.f32.mrb[1].mxu0 }
 0x152   : > { %v346_v30 = vadd.f32 %v503_v26, %v345_v29 }
 0x153   : > { %v355_v31 = vmax.f32 %v351_v28, 0.0 }
 0x154   : > { %v354_v32 = vmax.f32 %v346_v30, 0.0 }
 0x155   : > { %357 = vst [vmem:[%s248_s24 + $0x8] sm:$0xff] %v355_v31 }
 0x156   : > { %356 = vst [vmem:[%s248_s24] sm:$0xff] %v354_v32 }
 0x157   : > { %744 = shalt.err (!%p741_p5)
}
 0x158   : > { %s745_s6 = scalar_lea.hbm %s1033_s25, 256  ;;  %s749_s19 = scalar_lea.hbm %s1085_s3, 512 }
 0x159   : > { %p746_p9 = scmp.ne.s32.totalorder %s1033_s25, %s745_s6  ;;  %p750_p3 = scmp.lt.u32.totalorder %s1033_s25, %s1085_s3 }
 0x15a   : > { %p751_p7 = scmp.lt.u32.totalorder %s749_s19, %s745_s6  ;;  %p753_p4 = scmp.lt.u32.totalorder %s745_s6, %s1033_s25 }
 0x15b   : > { %p747_p1 = pnand %p746_p9, %p945_p10 }
 0x15c   : > { %p752_p13 = por %p751_p7, %p750_p3 }
 0x15d   : > { %p748_p2 = pneg %p747_p1 }
 0x15e   : > { %p754_p6 = por %p753_p4, %p752_p13 }
 0x160   : > { %p755_p8 = pnand %p754_p6, %p748_p2 }
 0x162   : > { %758 = shalt.err (!%p755_p8)
}
 0x163   : > { %s824_s24 = smov 128   ;;  %s825_s11 = smov 8  }
 0x164   : > { %602 = dma.vmem_to_hbm [thread:$0]  (%p945_p10), %s1028_s10, 256, %s1033_s25, %s359_s8, %s824_s24, %s824_s24, %s825_s11  }
 0x165 PF: > { %s390_s9 = sand.u32 1, %s797_s12   ;;  %p1103_p12 = scmp.ne.s32.totalorder %s1093_s23, 0 }
 0x166   : > { %p1104_p11 = scmp.ge.s32.totalorder %s817_s17, 2  ;;  %s391_s18 = scalar_lea.sflag [#allocation4], %s390_s9 }
 0x168   : > { %p613_p0 = pnand %p1104_p11, %p1103_p12 }
 0x16a   : > { %792 = dma.done.wait (!%p613_p0), %s391_s18, 256  }
 0x16b   : > { %794 = vsyncadd (!%p613_p0), %s391_s18, 4294967040  ;;  %s20_s17 = sadd.s32 1, %s817_s17   ;;  %s1105_s12 = smov %s801_s13 }
 0x16c   : > { %p17_p5 = scmp.ge.s32.totalorder %s20_s17, 4   ;;  %s1106_s13 = smov %s805_s14 }
 0x16d   : > { %s1107_s14 = smov %s954_s5  ;;  %s1108_s15 = smov %s813_s16 }
 0x16e   : > { %s1109_s16 = smov %s1111_s28  ;;  %19 = sbr.rel (!%p17_p5) target bundleno = 7 (0x7), region = 85 }
 0x175   :  { %396 = vsyncpa [#allocation3], 1 }
 0x176   :  { %398 = vsyncpa [#allocation3 + $0x1], 1 }
 0x177   :  { %399 = vsyncpa [#allocation6], 1 }
 0x178   :  { %400 = vsyncpa [#allocation4], 1 }
 0x179   :  { %402 = vsyncpa [#allocation4 + $0x1], 1 }

</bundles_post_ra>
